<compile_context>
chip_gen: v7x
topology: tpu7x:2x2x1
jax: 0.10.0
libtpu: 0.0.40
codegen_flags: <defaults>
</compile_context>

<pallas_src>
import functools
import numpy as np
import jax
import jax.numpy as jnp
from jax import lax
from jax.experimental import pallas as pl
from jax.experimental.pallas import tpu as pltpu


def _round_up(x: int, m: int) -> int:
    return (x + m - 1) // m * m


# ----------------------------------------------------------------------------
# Kernel A: pairwise IoU matching (box_iou + max/first-argmax over gt + threshold)
#   preds: (4, tn) lane-dense tile; gt: full (m_pad, 4) set resident; grid = (n_pad//tn,)
# ----------------------------------------------------------------------------
def _match_kernel(p_ref, g_ref, o_ref, *, n_gt, iou_threshold):
    # pred coords along lanes, gt coords along sublanes; implicit broadcasting only.
    px1 = p_ref[0:1, :].astype(jnp.float32)   # (1, tn)
    py1 = p_ref[1:2, :].astype(jnp.float32)
    px2 = p_ref[2:3, :].astype(jnp.float32)
    py2 = p_ref[3:4, :].astype(jnp.float32)
    gx1 = g_ref[:, 0:1].astype(jnp.float32)   # (m_pad, 1)
    gy1 = g_ref[:, 1:2].astype(jnp.float32)
    gx2 = g_ref[:, 2:3].astype(jnp.float32)
    gy2 = g_ref[:, 3:4].astype(jnp.float32)

    iw = jnp.maximum(jnp.minimum(px2, gx2) - jnp.maximum(px1, gx1), 0.0)
    ih = jnp.maximum(jnp.minimum(py2, gy2) - jnp.maximum(py1, gy1), 0.0)
    inter = iw * ih                                               # (m_pad, tn)
    union = (px2 - px1) * (py2 - py1) + (gx2 - gx1) * (gy2 - gy1) - inter
    # Exact divide on purpose: the argmax/threshold decision must match the reference.
    iou = inter / jnp.maximum(union, 1e-12)

    gt_row = lax.broadcasted_iota(jnp.int32, inter.shape, 0)
    iou = jnp.where(gt_row < n_gt, iou, -1.0)                     # mask padded gt rows

    col_max = jnp.max(iou, axis=0, keepdims=True)                 # (1, tn)
    first_arg = jnp.min(jnp.where(iou == col_max, gt_row, jnp.int32(2 ** 30)),
                        axis=0, keepdims=True)                    # first-occurrence argmax
    o_ref[...] = jnp.where(col_max >= iou_threshold, first_arg, -1).astype(o_ref.dtype)


def match_predictions_to_targets(bbox_pred, gt_locations, iou_threshold, *, tn: int = 1024):
    n = bbox_pred.shape[0]
    m = gt_locations.shape[0]
    m_pad = _round_up(max(m, 8), 8)
    tn = min(tn, _round_up(max(n, 128), 128))
    # Keep the (m_pad, tn) IoU working set modest (matters only for huge gt counts).
    while tn > 128 and m_pad * tn * 4 > (4 << 20):
        tn //= 2
    n_pad = _round_up(n, tn)

    pred_t = jnp.pad(bbox_pred.T, ((0, 0), (0, n_pad - n)))       # (4, n_pad), lane-dense
    gt_pad = jnp.pad(gt_locations, ((0, m_pad - m), (0, 0)))      # (m_pad, 4), fully resident

    kernel = functools.partial(_match_kernel, n_gt=m,
                               iou_threshold=float(iou_threshold))
    cost = pl.CostEstimate(
        flops=20 * n_pad * m_pad, transcendentals=0,
        bytes_accessed=4 * (4 * n_pad + (n_pad // tn) * 4 * m_pad + n_pad))

    matched = pl.pallas_call(
        kernel,
        out_shape=jax.ShapeDtypeStruct((1, n_pad), jnp.int32),
        grid_spec=pltpu.PrefetchScalarGridSpec(
            num_scalar_prefetch=0,
            grid=(n_pad // tn,),
            in_specs=[
                pl.BlockSpec((4, tn), lambda i: (0, i)),          # preds (transposed)
                pl.BlockSpec((m_pad, 4), lambda i: (0, 0)),       # whole gt set, one block
            ],
            out_specs=pl.BlockSpec((1, tn), lambda i: (0, i)),
        ),
        compiler_params=pltpu.CompilerParams(dimension_semantics=("parallel",)),
        cost_estimate=cost,
    )(pred_t, gt_pad)
    return matched[0, :n]


# ----------------------------------------------------------------------------
# Kernel B: fused CrossEntropy + SmoothL1 + (1 - IoU) reduction, lane-major layout.
#   logits: (c_pad, n_pad)  classes on sublanes, rows on lanes
#   labels: (1, n_pad)      boxes+gt packed: (8, n_pad)  [rows 0-3 pred, 4-7 gt]
#   grid = (2, steps): leading size-2 "parallel" axis = megacore split on v7x.
# ----------------------------------------------------------------------------
def _loss_kernel(logit_ref, label_ref, box_ref,
                 cls_out, reg_out, iou_out,
                 cls_acc, reg_acc, iou_acc,
                 *, tn, steps, n_valid):
    c = pl.program_id(0)          # core-split axis
    i = pl.program_id(1)          # row-tile axis within this core's shard

    @pl.when(i == 0)
    def _():
        cls_acc[...] = jnp.zeros_like(cls_acc)
        reg_acc[...] = jnp.zeros_like(reg_acc)
        iou_acc[...] = jnp.zeros_like(iou_acc)

    base = (c * steps + i) * tn
    lane = lax.broadcasted_iota(jnp.int32, (1, tn), 1)
    valid = (base + lane) < n_valid                               # (1, tn)

    # ---- cross-entropy (classes on sublanes, rows on lanes) ----
    logits = logit_ref[...].astype(jnp.float32)                   # (c_pad, tn)
    labels = label_ref[...]                                       # (1, tn) int32
    cls_iota = lax.broadcasted_iota(jnp.int32, logits.shape, 0)
    mx = jnp.max(logits, axis=0, keepdims=True)                   # (1, tn)
    lse = mx + jnp.log(jnp.sum(jnp.exp(logits - mx), axis=0, keepdims=True))
    picked = jnp.sum(jnp.where(cls_iota == labels, logits, 0.0),
                     axis=0, keepdims=True)
    cls_acc[...] += jnp.where(valid, lse - picked, 0.0)

    # ---- boxes: coords on sublanes (0-3 pred, 4-7 gt), rows on lanes ----
    px1 = box_ref[0:1, :].astype(jnp.float32)
    py1 = box_ref[1:2, :].astype(jnp.float32)
    px2 = box_ref[2:3, :].astype(jnp.float32)
    py2 = box_ref[3:4, :].astype(jnp.float32)
    gx1 = box_ref[4:5, :].astype(jnp.float32)
    gy1 = box_ref[5:6, :].astype(jnp.float32)
    gx2 = box_ref[6:7, :].astype(jnp.float32)
    gy2 = box_ref[7:8, :].astype(jnp.float32)

    def smooth_l1(d):
        ad = jnp.abs(d)
        return jnp.where(ad < 1.0, 0.5 * d * d, ad - 0.5)

    reg_step = (smooth_l1(px1 - gx1) + smooth_l1(py1 - gy1)
                + smooth_l1(px2 - gx2) + smooth_l1(py2 - gy2))    # (1, tn)
    reg_acc[...] += jnp.where(valid, reg_step, 0.0)

    inter = (jnp.maximum(jnp.minimum(px2, gx2) - jnp.maximum(px1, gx1), 0.0) *
             jnp.maximum(jnp.minimum(py2, gy2) - jnp.maximum(py1, gy1), 0.0))
    union = (px2 - px1) * (py2 - py1) + (gx2 - gx1) * (gy2 - gy1) - inter
    # approx reciprocal runs on the EUP slot; fine for a mean loss (not for matching).
    iou_row = inter * pl.reciprocal(jnp.maximum(union, 1e-12), approx=True)
    iou_acc[...] += jnp.where(valid, 1.0 - iou_row, 0.0)

    @pl.when(i == pl.num_programs(1) - 1)
    def _():
        cls_out[...] = cls_acc[...].reshape(cls_out.shape).astype(cls_out.dtype)
        reg_out[...] = reg_acc[...].reshape(reg_out.shape).astype(reg_out.dtype)
        iou_out[...] = iou_acc[...].reshape(iou_out.shape).astype(iou_out.dtype)


def _fused_losses(sel_logits, sel_labels, sel_boxes, sel_gt_boxes, num_classes,
                  *, tn: int = 1024):
    n = sel_logits.shape[0]
    c_pad = _round_up(max(num_classes, 128), 128)
    tn = min(tn, _round_up(max(n, 128), 128))
    # Keep double-buffered (c_pad, tn) logits tiles well under scoped VMEM even on v7x.
    while tn > 128 and c_pad * tn * 4 > (8 << 20):
        tn //= 2
    n_pad = _round_up(n, 2 * tn)           # 2 = megacore split factor
    steps = n_pad // (2 * tn)

    ldt = sel_logits.dtype
    fill = float(jnp.finfo(ldt).min) / 2 if jnp.issubdtype(ldt, jnp.floating) else -1e9
    logits_t = jnp.pad(sel_logits.T,
                       ((0, c_pad - num_classes), (0, n_pad - n)),
                       constant_values=fill)                       # (c_pad, n_pad)
    labels_row = jnp.pad(sel_labels.astype(jnp.int32)[None, :],
                         ((0, 0), (0, n_pad - n)))                 # (1, n_pad)
    boxes_packed = jnp.pad(jnp.concatenate([sel_boxes.T, sel_gt_boxes.T], axis=0),
                           ((0, 0), (0, n_pad - n)))               # (8, n_pad)

    kernel = functools.partial(_loss_kernel, tn=tn, steps=steps, n_valid=n)
    cost = pl.CostEstimate(
        flops=n_pad * (6 * c_pad + 80),
        transcendentals=n_pad * (c_pad + 2),
        bytes_accessed=4 * (c_pad * n_pad + n_pad + 8 * n_pad + 6 * tn))

    col_map = lambda c, i: (0, c * steps + i)
    part_spec = pl.BlockSpec((1, 1, tn), lambda c, i: (c, 0, 0))
    out_shape = tuple(jax.ShapeDtypeStruct((2, 1, tn), jnp.float32) for _ in range(3))

    cls_p, reg_p, iou_p = pl.pallas_call(
        kernel,
        out_shape=out_shape,
        grid_spec=pltpu.PrefetchScalarGridSpec(
            num_scalar_prefetch=0,
            grid=(2, steps),
            in_specs=[
                pl.BlockSpec((c_pad, tn), col_map),
                pl.BlockSpec((1, tn), col_map),
                pl.BlockSpec((8, tn), col_map),
            ],
            out_specs=(part_spec, part_spec, part_spec),
            scratch_shapes=[pltpu.VMEM((1, tn), jnp.float32)] * 3,
        ),
        compiler_params=pltpu.CompilerParams(
            dimension_semantics=("parallel", "arbitrary")),
        cost_estimate=cost,
    )(logits_t, labels_row, boxes_packed)

    # Reduce the per-core lane partials (cheap, tiny) and apply the means.
    cls_l = jnp.sum(cls_p) / n
    reg_l = jnp.sum(reg_p) / (n * 4)
    iou_l = jnp.sum(iou_p) / n
    return cls_l, reg_l, iou_l


# ----------------------------------------------------------------------------
# SSDLoss.forward equivalent
# ----------------------------------------------------------------------------
def ssd_loss_forward(cls_logits, bbox_pred, targets, *, num_classes, iou_threshold=0.5):
    gt_classes = jnp.concatenate([t["labels"] for t in targets], axis=0)
    gt_locations = jnp.concatenate([t["boxes"] for t in targets], axis=0)

    n = cls_logits.shape[0]
    m = gt_classes.shape[0]
    if n == 0 or m == 0:
        # TODO(synk): PyTorch reference errors on empty targets/preds; return zero losses instead.
        z = jnp.zeros((), jnp.float32)
        return {"cls_loss": z, "reg_loss": z, "iou_loss": z, "total_loss": z}

    matched = match_predictions_to_targets(bbox_pred, gt_locations, iou_threshold)

    # PyTorch advanced indexing: -1 wraps to the last row of whatever array is indexed.
    idx_pred = jnp.where(matched < 0, matched + n, matched)
    idx_gt = jnp.where(matched < 0, matched + m, matched)

    sel_logits = jnp.take(cls_logits, idx_pred, axis=0)    # row gathers stay in plain JAX
    sel_boxes = jnp.take(bbox_pred, idx_pred, axis=0)
    sel_classes = jnp.take(gt_classes, idx_gt, axis=0)
    sel_gt_boxes = jnp.take(gt_locations, idx_gt, axis=0)

    cls_l, reg_l, iou_l = _fused_losses(sel_logits, sel_classes, sel_boxes,
                                        sel_gt_boxes, num_classes)
    return {"cls_loss": cls_l, "reg_loss": reg_l, "iou_loss": iou_l,
            "total_loss": cls_l + reg_l + iou_l}


class SSDLossPallas:
    """Mirrors the PyTorch SSDLoss interface (concrete CE / SmoothL1 / 1-IoU losses)."""

    def __init__(self, num_classes: int, iou_threshold: float = 0.5):
        self.num_classes = num_classes
        self.iou_threshold = iou_threshold

    def __call__(self, cls_logits, bbox_pred, targets):
        return ssd_loss_forward(cls_logits, bbox_pred, targets,
                                num_classes=self.num_classes,
                                iou_threshold=self.iou_threshold)


# ----------------------------------------------------------------------------
# Pure-JAX reference (mirrors the PyTorch semantics) + demo
# ----------------------------------------------------------------------------
def _reference(cls_logits, bbox_pred, targets, num_classes, iou_threshold):
    gt_classes = jnp.concatenate([t["labels"] for t in targets], axis=0)
    gt_locations = jnp.concatenate([t["boxes"] for t in targets], axis=0)
    a, b = bbox_pred, gt_locations
    lt = jnp.maximum(a[:, None, :2], b[None, :, :2])
    rb = jnp.minimum(a[:, None, 2:], b[None, :, 2:])
    wh = jnp.maximum(rb - lt, 0.0)
    inter = wh[..., 0] * wh[..., 1]
    area_a = (a[:, 2] - a[:, 0]) * (a[:, 3] - a[:, 1])
    area_b = (b[:, 2] - b[:, 0]) * (b[:, 3] - b[:, 1])
    iou = inter / jnp.maximum(area_a[:, None] + area_b[None, :] - inter, 1e-12)
    max_iou = jnp.max(iou, axis=1)
    matched = jnp.argmax(iou, axis=1).astype(jnp.int32)
    matched = jnp.where(max_iou < iou_threshold, -1, matched)

    n, m = cls_logits.shape[0], gt_classes.shape[0]
    idx_pred = jnp.where(matched < 0, matched + n, matched)
    idx_gt = jnp.where(matched < 0, matched + m, matched)
    sl, sb = cls_logits[idx_pred], bbox_pred[idx_pred]
    sc, sg = gt_classes[idx_gt], gt_locations[idx_gt]

    mx = jnp.max(sl, axis=1, keepdims=True)
    lse = (mx + jnp.log(jnp.sum(jnp.exp(sl - mx), axis=1, keepdims=True)))[:, 0]
    cls_loss = jnp.mean(lse - sl[jnp.arange(n), sc])
    d = sb - sg
    ad = jnp.abs(d)
    reg_loss = jnp.mean(jnp.where(ad < 1.0, 0.5 * d * d, ad - 0.5))
    inter2 = (jnp.maximum(jnp.minimum(sb[:, 2], sg[:, 2]) - jnp.maximum(sb[:, 0], sg[:, 0]), 0.0) *
              jnp.maximum(jnp.minimum(sb[:, 3], sg[:, 3]) - jnp.maximum(sb[:, 1], sg[:, 1]), 0.0))
    union2 = ((sb[:, 2] - sb[:, 0]) * (sb[:, 3] - sb[:, 1]) +
              (sg[:, 2] - sg[:, 0]) * (sg[:, 3] - sg[:, 1]) - inter2)
    iou_loss = jnp.mean(1.0 - inter2 / jnp.maximum(union2, 1e-12))
    return {"cls_loss": cls_loss, "reg_loss": reg_loss, "iou_loss": iou_loss,
            "total_loss": cls_loss + reg_loss + iou_loss}


if __name__ == "__main__":
    key = jax.random.PRNGKey(0)
    k1, k2, k3, k4 = jax.random.split(key, 4)

    NUM_CLASSES = 8
    N_PRED = 256
    BATCH = 2
    BOXES_PER_IMAGE = 6
    IOU_THRESHOLD = 0.5

    def make_boxes(k, num):
        ka, kb = jax.random.split(k)
        xy = jax.random.uniform(ka, (num, 2), minval=0.0, maxval=0.7)
        wh = jax.random.uniform(kb, (num, 2), minval=0.05, maxval=0.3)
        return jnp.concatenate([xy, xy + wh], axis=1).astype(jnp.float32)

    cls_logits = jax.random.normal(k1, (N_PRED, NUM_CLASSES), dtype=jnp.float32)
    bbox_pred = make_boxes(k2, N_PRED)
    box_keys = jax.random.split(k3, BATCH)
    lbl_keys = jax.random.split(k4, BATCH)
    targets = [{"boxes": make_boxes(box_keys[b], BOXES_PER_IMAGE),
                "labels": jax.random.randint(lbl_keys[b], (BOXES_PER_IMAGE,), 0,
                                             NUM_CLASSES, dtype=jnp.int32)}
               for b in range(BATCH)]

    loss_fn = SSDLossPallas(NUM_CLASSES, IOU_THRESHOLD)
    out = loss_fn(cls_logits, bbox_pred, targets)
    jax.block_until_ready(out["total_loss"])

    ref = _reference(cls_logits, bbox_pred, targets, NUM_CLASSES, IOU_THRESHOLD)
    # iou/total use the approximate (EUP) reciprocal in-kernel -> slightly looser tolerance.
    tols = {"cls_loss": (1e-5, 1e-5), "reg_loss": (1e-5, 1e-5),
            "iou_loss": (5e-3, 5e-3), "total_loss": (5e-3, 5e-3)}
    for name, (rt, at) in tols.items():
        np.testing.assert_allclose(np.asarray(out[name]), np.asarray(ref[name]),
                                   rtol=rt, atol=at)

    print("KERNEL_OK")
</pallas_src>

<mosaic_0001>
module attributes {stable_mosaic.version = 11 : i64} {
  func.func @_match_kernel(%arg0: i32, %arg1: memref<4x256xf32, #tpu.memory_space<vmem>>, %arg2: memref<16x4xf32, #tpu.memory_space<vmem>>, %arg3: memref<1x256xi32, #tpu.memory_space<vmem>>) attributes {dimension_semantics = [#tpu.dimension_semantics<parallel>], iteration_bounds = array<i64: 1>, scalar_prefetch = 0 : i64, scratch_operands = 0 : i64, tpu.core_type = #tpu.core_type<tc>, window_params = [{transform_indices = @transform_0, window_bounds = array<i64: 4, 256>}, {pipeline_mode = #tpu.pipeline_mode<synchronous>, transform_indices = @transform_1, window_bounds = array<i64: 16, 4>}, {transform_indices = @transform_2, window_bounds = array<i64: 1, 256>}]} {
    %c0 = arith.constant 0 : index
    %c0_0 = arith.constant 0 : index
    %0 = vector.load %arg1[%c0, %c0_0] : memref<4x256xf32, #tpu.memory_space<vmem>>, vector<1x256xf32>
    %c1 = arith.constant 1 : index
    %c0_1 = arith.constant 0 : index
    %1 = vector.load %arg1[%c1, %c0_1] : memref<4x256xf32, #tpu.memory_space<vmem>>, vector<1x256xf32>
    %c2 = arith.constant 2 : index
    %c0_2 = arith.constant 0 : index
    %2 = vector.load %arg1[%c2, %c0_2] : memref<4x256xf32, #tpu.memory_space<vmem>>, vector<1x256xf32>
    %c3 = arith.constant 3 : index
    %c0_3 = arith.constant 0 : index
    %3 = vector.load %arg1[%c3, %c0_3] : memref<4x256xf32, #tpu.memory_space<vmem>>, vector<1x256xf32>
    %c0_4 = arith.constant 0 : index
    %c0_5 = arith.constant 0 : index
    %4 = vector.load %arg2[%c0_4, %c0_5] : memref<16x4xf32, #tpu.memory_space<vmem>>, vector<16x1xf32>
    %c0_6 = arith.constant 0 : index
    %c1_7 = arith.constant 1 : index
    %5 = vector.load %arg2[%c0_6, %c1_7] : memref<16x4xf32, #tpu.memory_space<vmem>>, vector<16x1xf32>
    %c0_8 = arith.constant 0 : index
    %c2_9 = arith.constant 2 : index
    %6 = vector.load %arg2[%c0_8, %c2_9] : memref<16x4xf32, #tpu.memory_space<vmem>>, vector<16x1xf32>
    %c0_10 = arith.constant 0 : index
    %c3_11 = arith.constant 3 : index
    %7 = vector.load %arg2[%c0_10, %c3_11] : memref<16x4xf32, #tpu.memory_space<vmem>>, vector<16x1xf32>
    %8 = vector.broadcast %2 : vector<1x256xf32> to vector<16x256xf32>
    %9 = vector.broadcast %6 : vector<16x1xf32> to vector<16x256xf32>
    %10 = arith.minimumf %8, %9 : vector<16x256xf32>
    %11 = vector.broadcast %0 : vector<1x256xf32> to vector<16x256xf32>
    %12 = vector.broadcast %4 : vector<16x1xf32> to vector<16x256xf32>
    %13 = arith.maximumf %11, %12 : vector<16x256xf32>
    %14 = arith.subf %10, %13 : vector<16x256xf32>
    %cst = arith.constant 0.000000e+00 : f32
    %15 = vector.broadcast %cst : f32 to vector<16x256xf32>
    %16 = arith.maximumf %14, %15 : vector<16x256xf32>
    %17 = vector.broadcast %3 : vector<1x256xf32> to vector<16x256xf32>
    %18 = vector.broadcast %7 : vector<16x1xf32> to vector<16x256xf32>
    %19 = arith.minimumf %17, %18 : vector<16x256xf32>
    %20 = vector.broadcast %1 : vector<1x256xf32> to vector<16x256xf32>
    %21 = vector.broadcast %5 : vector<16x1xf32> to vector<16x256xf32>
    %22 = arith.maximumf %20, %21 : vector<16x256xf32>
    %23 = arith.subf %19, %22 : vector<16x256xf32>
    %cst_12 = arith.constant 0.000000e+00 : f32
    %24 = vector.broadcast %cst_12 : f32 to vector<16x256xf32>
    %25 = arith.maximumf %23, %24 : vector<16x256xf32>
    %26 = arith.mulf %16, %25 : vector<16x256xf32>
    %27 = arith.subf %2, %0 : vector<1x256xf32>
    %28 = arith.subf %3, %1 : vector<1x256xf32>
    %29 = arith.mulf %27, %28 : vector<1x256xf32>
    %30 = arith.subf %6, %4 : vector<16x1xf32>
    %31 = arith.subf %7, %5 : vector<16x1xf32>
    %32 = arith.mulf %30, %31 : vector<16x1xf32>
    %33 = vector.broadcast %29 : vector<1x256xf32> to vector<16x256xf32>
    %34 = vector.broadcast %32 : vector<16x1xf32> to vector<16x256xf32>
    %35 = arith.addf %33, %34 : vector<16x256xf32>
    %36 = arith.subf %35, %26 : vector<16x256xf32>
    %cst_13 = arith.constant 9.99999996E-13 : f32
    %37 = vector.broadcast %cst_13 : f32 to vector<16x256xf32>
    %38 = arith.maximumf %36, %37 : vector<16x256xf32>
    %39 = arith.divf %26, %38 : vector<16x256xf32>
    %40 = tpu.iota {dimensions = array<i32: 0>} : vector<16x256xi32>
    %c12_i32 = arith.constant 12 : i32
    %41 = vector.broadcast %c12_i32 : i32 to vector<16x256xi32>
    %42 = arith.cmpi slt, %40, %41 : vector<16x256xi32>
    %cst_14 = arith.constant -1.000000e+00 : f32
    %43 = vector.broadcast %cst_14 : f32 to vector<16x256xf32>
    %44 = arith.select %42, %39, %43 : vector<16x256xi1>, vector<16x256xf32>
    %cst_15 = arith.constant dense<0xFF800000> : vector<256xf32>
    %45 = vector.multi_reduction <maximumf>, %44, %cst_15 [0] : vector<16x256xf32> to vector<256xf32>
    %46 = vector.shape_cast %45 : vector<256xf32> to vector<1x256xf32>
    %47 = vector.broadcast %46 : vector<1x256xf32> to vector<16x256xf32>
    %48 = arith.cmpf oeq, %44, %47 : vector<16x256xf32>
    %c1073741824_i32 = arith.constant 1073741824 : i32
    %49 = vector.broadcast %c1073741824_i32 : i32 to vector<16x256xi32>
    %50 = arith.select %48, %40, %49 : vector<16x256xi1>, vector<16x256xi32>
    %cst_16 = arith.constant dense<2147483647> : vector<256xi32>
    %51 = vector.multi_reduction <minsi>, %50, %cst_16 [0] : vector<16x256xi32> to vector<256xi32>
    %52 = vector.shape_cast %51 : vector<256xi32> to vector<1x256xi32>
    %cst_17 = arith.constant 5.000000e-01 : f32
    %53 = vector.broadcast %cst_17 : f32 to vector<1x256xf32>
    %54 = arith.cmpf oge, %46, %53 : vector<1x256xf32>
    %c-1_i32 = arith.constant -1 : i32
    %55 = vector.broadcast %c-1_i32 : i32 to vector<1x256xi32>
    %56 = arith.select %54, %52, %55 : vector<1x256xi1>, vector<1x256xi32>
    %c0_18 = arith.constant 0 : index
    %c0_19 = arith.constant 0 : index
    %57 = vector.load %arg3[%c0_18, %c0_19] : memref<1x256xi32, #tpu.memory_space<vmem>>, vector<1x256xi32>
    tpu.vector_store %arg3[%c0_18, %c0_19], %56 {strides = array<i32>} : memref<1x256xi32, #tpu.memory_space<vmem>>, vector<1x256xi32>,
    return
  }
  func.func @transform_0(%arg0: i32) -> (i32, i32) {
    %c0_i32 = arith.constant 0 : i32
    %c0_i32_0 = arith.constant 0 : i32
    return %c0_i32, %arg0 : i32, i32
  }
  func.func @transform_1(%arg0: i32) -> (i32, i32) {
    %c0_i32 = arith.constant 0 : i32
    %c0_i32_0 = arith.constant 0 : i32
    %c0_i32_1 = arith.constant 0 : i32
    return %c0_i32, %c0_i32_0 : i32, i32
  }
  func.func @transform_2(%arg0: i32) -> (i32, i32) {
    %c0_i32 = arith.constant 0 : i32
    %c0_i32_0 = arith.constant 0 : i32
    return %c0_i32, %arg0 : i32, i32
  }
}

</mosaic_0001>

<bundles_post_ra>
// kernel: tpu_custom_call.1
= control target key start
LH: loop header
LB: loop body
LE: loop exit
PB: predicated region body
PF: predicated region fallthrough
CT: control target
= control target key end

     0   :  { %s341_s11 = smov 2   ;;  %v342_v1 = vmov 0   ;;  %s404_s0 = inlined_call_operand.vmem [shape: f32[4,256], index: 0, kind: input, shape index: {}]   ;;  %s405_s1 = inlined_call_operand.vmem [shape: f32[16,4], index: 1, kind: input, shape index: {}]   ;;  %s406_s2 = inlined_call_operand.hbm [shape: s32[1,256], index: 2, kind: output, shape index: {}]  }
   0x1   :  { %v20_v0 = vld [vmem:[%s405_s1 + $0x8] sm:$0xff]  ;;  %300 = vset.pattern.permute.xlu1 %v342_v1 }
   0x2   :  { %140 = vrot.lane.b32.xlu0 %v20_v0, %s341_s11 }
   0x3   :  { %7 = vsyncpa [#allocation3], 0  ;;  %v19_v2 = vld [vmem:[%s405_s1] sm:$0xff]  ;;  %v343_v3 = vmov 2   ;;  %v344_v4 = vmov 1   ;;  %v345_v5 = vmov 3   ;;  %v22_v16 = vlaneseq }
   0x4   :  { %299 = vset.pattern.permute.xlu0 %v343_v3  ;;  %s346_s14 = smov 127   ;;  %v289_v22 = vld [vmem:[%s404_s0 + $0x2] ss:$4 sm:$0x3] }
   0x5   :  { %v371_v17 = vshrl.u32 %v22_v16, 7  ;;  %v288_v23 = vld [vmem:[%s404_s0 + $0x1] ss:$4 sm:$0x3]  ;;  %vm271_vm15 = vcmp.lt.s32.totalorder %v22_v16, 256 }
   0x6   :  { %138 = vrot.lane.b32.xlu0 %v19_v2, %s341_s11  ;;  %v12_v24 = vld [vmem:[%s404_s0] ss:$4 sm:$0x3]  ;;  %v290_v25 = vld [vmem:[%s404_s0 + $0x3] ss:$4 sm:$0x3] }
   0x7   :  { %v24_v20 = vsub.s32 0, %v371_v17  ;;  %v28_v21 = vsub.s32 1, %v371_v17  ;;  %v135_v37 = vsub.f32 %v289_v22, %v12_v24  ;;  %v136_v38 = vsub.f32 %v290_v25, %v288_v23  ;;  %s348_s0 = smov [#allocation2]  }
   0x8   :  { %s280_s22 = sshll.u32 %s348_s0, 4  ;;  %s281_s22 = int_to_ptr.vmem [resolvable:$true] %s280_s22 }
   0x9   :  { %v25_v28 = vrot.slane %v289_v22, %v24_v20  ;;  %v29_v29 = vrot.slane %v289_v22, %v28_v21  ;;  %v104_v30 = vrot.slane %v288_v23, %v24_v20  ;;  %v108_v31 = vrot.slane %v288_v23, %v28_v21  ;;  %s317_s23 = scalar_lea.vmem %s281_s22, 32  ;;  %p322_p1 = scmp.lt.s32.totalorder %s281_s22, %s281_s22 }
   0xa   :  { %39 = vperm.xlu0 %299, %v20_v0   ;;  %v50_v32 = vrot.slane %v12_v24, %v24_v20  ;;  %v54_v33 = vrot.slane %v12_v24, %v28_v21  ;;  %v81_v34 = vrot.slane %v290_v25, %v24_v20  ;;  %v85_v35 = vrot.slane %v290_v25, %v28_v21  ;;  %p318_p0 = scmp.ne.s32.totalorder %s281_s22, %s317_s23  ;;  %p323_p2 = scmp.lt.s32.totalorder %s317_s23, %s317_s23 }
   0xb   :  { %v137_v52 = vmul.f32 %v136_v38, %v135_v37 }
   0xc   :  { %p324_p3 = por %p323_p2, %p322_p1 }
   0xd   :  { %v160_v61 = vrot.slane %v137_v52, %v24_v20  ;;  %v164_v62 = vrot.slane %v137_v52, %v28_v21 }
   0xe   :  { %302 = vset.pattern.permute.xlu0 %v344_v4  ;;  %p325_p4 = pnand %p324_p3, %p318_p0 }
   0xf   :  { %116 = vperm.xlu0 %302, %v20_v0  }
  0x13   :  { %305 = vset.pattern.permute.xlu0 %v345_v5 }
  0x14   :  { %89 = vperm.xlu0 %305, %v19_v2  }
  0x18   :  { %308 = vset.pattern.permute.xlu0 %v343_v3 }
  0x74   :  { %v141_v6 = vpop.permute.xlu0 %140 }
  0x75   :  { %v145_v7 = vsub.f32 %v20_v0, %v141_v6 }
  0x77   :  { %150 = vrot.lane.b32.xlu1 %v145_v7, %s346_s14 }
  0x78   :  { %v139_v8 = vpop.permute.xlu0 %138 }
  0x79   :  { %v144_v9 = vsub.f32 %v19_v2, %v139_v8 }
  0x7b   :  { %148 = vrot.lane.b32.xlu1 %v144_v9, %s346_s14 }
  0x7f   :  { %62 = vperm.xlu1 %300, %v20_v0  }
  0x83   :  { %301 = vset.pattern.permute.xlu1 %v345_v5 }
  0x84   :  { %93 = vperm.xlu1 %301, %v20_v0  }
  0x88   :  { %303 = vset.pattern.permute.xlu1 %v343_v3 }
  0x89   :  { %34 = vperm.xlu1 %303, %v19_v2   ;;  %v40_v18 = vpop.permute.xlu0 %39 }
  0x8a   :  { %v44_v39 = vmin.f32 %v25_v28, %v40_v18  ;;  %v45_v40 = vmin.f32 %v29_v29, %v40_v18 }
  0x8d   :  { %304 = vset.pattern.permute.xlu1 %v342_v1 }
  0x8e   :  { %58 = vperm.xlu1 %304, %v19_v2   ;;  %v117_v26 = vpop.permute.xlu0 %116 }
  0x8f   :  { %v121_v41 = vmax.f32 %v104_v30, %v117_v26  ;;  %v122_v42 = vmax.f32 %v108_v31, %v117_v26 }
  0x92   :  { %306 = vset.pattern.permute.xlu1 %v344_v4 }
  0x93   :  { %112 = vperm.xlu1 %306, %v19_v2   ;;  %v90_v36 = vpop.permute.xlu0 %89 }
  0x94   :  { %v96_v48 = vmin.f32 %v81_v34, %v90_v36  ;;  %v97_v51 = vmin.f32 %v85_v35, %v90_v36 }
  0x97   :  { %307 = vset.pattern.permute.xlu1 %v343_v3 }
  0xe9   :  { %v151_v10 = vpop.permute.xlu1 %150 }
  0xea   :  { %v155_v11 = vmul.f32 %v151_v10, %v145_v7 }
  0xec   :  { %174 = vperm.xlu1 %307, %v155_v11  }
  0xed   :  { %v149_v12 = vpop.permute.xlu1 %148 }
  0xee   :  { %v154_v13 = vmul.f32 %v149_v12, %v144_v9 }
  0xf0   :  { %169 = vperm.xlu0 %308, %v154_v13  }
  0xfe   :  { %v63_v14 = vpop.permute.xlu1 %62 }
  0xff   :  { %v67_v43 = vmax.f32 %v50_v32, %v63_v14  ;;  %v68_v44 = vmax.f32 %v54_v33, %v63_v14 }
 0x101   :  { %v71_v57 = vsub.f32 %v44_v39, %v67_v43  ;;  %v72_v58 = vsub.f32 %v45_v40, %v68_v44 }
 0x103   :  { %v94_v15 = vpop.permute.xlu1 %93  ;;  %v75_v3 = vmax.f32 %v71_v57, 0.0  ;;  %v76_v4 = vmax.f32 %v72_v58, 0.0 }
 0x104   :  { %v98_v45 = vmin.f32 %v81_v34, %v94_v15  ;;  %v99_v46 = vmin.f32 %v85_v35, %v94_v15 }
 0x106   :  { %v125_v59 = vsub.f32 %v98_v45, %v121_v41  ;;  %v126_v60 = vsub.f32 %v99_v46, %v122_v42 }
 0x108   :  { %v35_v19 = vpop.permute.xlu1 %34  ;;  %v129_v5 = vmax.f32 %v125_v59, 0.0  ;;  %v130_v6 = vmax.f32 %v126_v60, 0.0 }
 0x109   :  { %v42_v49 = vmin.f32 %v25_v28, %v35_v19  ;;  %v43_v50 = vmin.f32 %v29_v29, %v35_v19 }
 0x10a   :  { %v133_v12 = vmul.f32 %v129_v5, %v75_v3  ;;  %v134_v13 = vmul.f32 %v130_v6, %v76_v4  ;;  %v347_v3 = vmov 1966171168  }
 0x10b   :  { %v256_v4 = vunpack.c.l.s4 %v347_v3 }
 0x10d   :  { %v59_v27 = vpop.permute.xlu1 %58 }
 0x10e   :  { %v65_v53 = vmax.f32 %v50_v32, %v59_v27  ;;  %v66_v54 = vmax.f32 %v54_v33, %v59_v27 }
 0x110   :  { %v69_v63 = vsub.f32 %v42_v49, %v65_v53  ;;  %v70_v0 = vsub.f32 %v43_v50, %v66_v54 }
 0x112   :  { %v113_v47 = vpop.permute.xlu1 %112  ;;  %v73_v7 = vmax.f32 %v69_v63, 0.0  ;;  %v74_v8 = vmax.f32 %v70_v0, 0.0 }
 0x113   :  { %v119_v55 = vmax.f32 %v104_v30, %v113_v47  ;;  %v120_v56 = vmax.f32 %v108_v31, %v113_v47  ;;  %v199_v31 = vadd.s32 8, %v371_v17 }
 0x115   :  { %v123_v1 = vsub.f32 %v96_v48, %v119_v55  ;;  %v124_v2 = vsub.f32 %v97_v51, %v120_v56  ;;  %vm201_vm0 = vcmp.lt.s32.totalorder %v199_v31, 12 }
 0x117   :  { %v127_v9 = vmax.f32 %v123_v1, 0.0  ;;  %v128_v10 = vmax.f32 %v124_v2, 0.0 }
 0x119   :  { %v131_v21 = vmul.f32 %v127_v9, %v73_v7  ;;  %v132_v22 = vmul.f32 %v128_v10, %v74_v8  ;;  %v257_v9 = vunpack.c.0.s8 %v256_v4 }
 0x16b   :  { %v175_v11 = vpop.permute.xlu1 %174 }
 0x16c   :  { %v179_v14 = vadd.f32 %v175_v11, %v160_v61  ;;  %v180_v15 = vadd.f32 %v175_v11, %v164_v62 }
 0x16e   :  { %v183_v18 = vsub.f32 %v179_v14, %v133_v12  ;;  %v184_v19 = vsub.f32 %v180_v15, %v134_v13  ;;  %v260_v14 = vsub.s32 %v257_v9, %v371_v17 }
 0x16f   :  { %v170_v20 = vpop.permute.xlu0 %169 }
 0x170   :  { %v187_v23 = vmax.f32 %v183_v18, 1e-12  ;;  %v188_v24 = vmax.f32 %v184_v19, 1e-12  ;;  %v177_v25 = vadd.f32 %v170_v20, %v160_v61  ;;  %v178_v26 = vadd.f32 %v170_v20, %v164_v62 }
 0x172   :  { %309 = vrcp.f32 %v187_v23  ;;  %v181_v27 = vsub.f32 %v177_v25, %v131_v21  ;;  %v182_v28 = vsub.f32 %v178_v26, %v132_v22 }
 0x173   :  { %311 = vrcp.f32 %v188_v24 }
 0x174   :  { %v185_v29 = vmax.f32 %v181_v27, 1e-12  ;;  %v186_v30 = vmax.f32 %v182_v28, 1e-12 }
 0x176   :  { %313 = vrcp.f32 %v185_v29 }
 0x177   :  { %315 = vrcp.f32 %v186_v30 }
 0x17c   :  { %v310_v32 = vpop.eup %309 }
 0x17d   :  { %v312_v33 = vpop.eup %311  ;;  %v194_v34 = vmul.f32 %v310_v32, %v133_v12 }
 0x17e   :  { %v196_v35 = vmul.f32 %v312_v33, %v134_v13 }
 0x17f   :  { %v204_v39 = vsel %vm201_vm0, %v194_v34, -1.0 }
 0x180   :  { %v314_v36 = vpop.eup %313  ;;  %v205_v41 = vsel %vm201_vm0, %v196_v35, -1.0 }
 0x181   :  { %v316_v37 = vpop.eup %315  ;;  %v190_v38 = vmul.f32 %v314_v36, %v131_v21 }
 0x182   :  { %v192_v40 = vmul.f32 %v316_v37, %v132_v22 }
 0x183   :  { %v206_v42 = vmax.f32 %v190_v38, %v204_v39 }
 0x184   :  { %v213_v43 = vmax.f32 %v192_v40, %v205_v41 }
 0x185   :  { %v207_v44 = vrot.slane %v206_v42, 4 }
 0x186   :  { %v214_v45 = vrot.slane %v213_v43, 4 }
 0x187   :  { %v208_v46 = vmax.f32 %v206_v42, %v207_v44 }
 0x188   :  { %v215_v47 = vmax.f32 %v213_v43, %v214_v45 }
 0x189   :  { %v209_v48 = vrot.slane %v208_v46, 2 }
 0x18a   :  { %v216_v49 = vrot.slane %v215_v47, 2 }
 0x18b   :  { %v210_v50 = vmax.f32 %v208_v46, %v209_v48 }
 0x18c   :  { %v217_v51 = vmax.f32 %v215_v47, %v216_v49 }
 0x18d   :  { %v211_v52 = vrot.slane %v210_v50, 1 }
 0x18e   :  { %v218_v53 = vrot.slane %v217_v51, 1 }
 0x18f   :  { %v212_v54 = vmax.f32 %v210_v50, %v211_v52 }
 0x190   :  { %v219_v55 = vmax.f32 %v217_v51, %v218_v53 }
 0x191   :  { %vm220_vm1 = vcmp.eq.f32.partialorder %v190_v38, %v212_v54  ;;  %vm222_vm2 = vcmp.eq.f32.partialorder %v204_v39, %v212_v54  ;;  %vm250_vm13 = vcmp.ge.f32.partialorder %v212_v54, 0.5 }
 0x192   :  { %vm221_vm3 = vcmp.eq.f32.partialorder %v192_v40, %v219_v55  ;;  %vm223_vm4 = vcmp.eq.f32.partialorder %v205_v41, %v219_v55  ;;  %v224_v56 = vsel %vm220_vm1, %v371_v17, 1073741824  ;;  %v226_v57 = vsel %vm222_vm2, %v199_v31, 1073741824 }
 0x193   :  { %v225_v58 = vsel %vm221_vm3, %v371_v17, 1073741824  ;;  %v227_v59 = vsel %vm223_vm4, %v199_v31, 1073741824  ;;  %vm228_vm5 = vcmp.lt.s32.totalorder %v224_v56, %v226_v57  ;;  %vm251_vm14 = vcmp.ge.f32.partialorder %v219_v55, 0.5 }
 0x194   :  { %v229_v60 = vsel %vm228_vm5, %v224_v56, %v226_v57  ;;  %vm239_vm6 = vcmp.lt.s32.totalorder %v225_v58, %v227_v59 }
 0x195   :  { %v230_v61 = vrot.slane %v229_v60, 4  ;;  %v240_v62 = vsel %vm239_vm6, %v225_v58, %v227_v59 }
 0x196   :  { %v241_v63 = vrot.slane %v240_v62, 4 }
 0x197   :  { %vm231_vm7 = vcmp.lt.s32.totalorder %v229_v60, %v230_v61 }
 0x198   :  { %v232_v0 = vsel %vm231_vm7, %v229_v60, %v230_v61  ;;  %vm242_vm8 = vcmp.lt.s32.totalorder %v240_v62, %v241_v63 }
 0x199   :  { %v243_v1 = vsel %vm242_vm8, %v240_v62, %v241_v63  ;;  %v233_v2 = vrot.slane %v232_v0, 2 }
 0x19a   :  { %v244_v5 = vrot.slane %v243_v1, 2 }
 0x19b   :  { %vm234_vm9 = vcmp.lt.s32.totalorder %v232_v0, %v233_v2 }
 0x19c   :  { %v235_v6 = vsel %vm234_vm9, %v232_v0, %v233_v2  ;;  %vm245_vm10 = vcmp.lt.s32.totalorder %v243_v1, %v244_v5 }
 0x19d   :  { %v236_v7 = vrot.slane %v235_v6, 1  ;;  %v246_v8 = vsel %vm245_vm10, %v243_v1, %v244_v5 }
 0x19e   :  { %v247_v10 = vrot.slane %v246_v8, 1 }
 0x19f   :  { %vm237_vm11 = vcmp.lt.s32.totalorder %v235_v6, %v236_v7 }
 0x1a0   :  { %v238_v11 = vsel %vm237_vm11, %v235_v6, %v236_v7  ;;  %vm248_vm12 = vcmp.lt.s32.totalorder %v246_v8, %v247_v10 }
 0x1a1   :  { %v249_v12 = vsel %vm248_vm12, %v246_v8, %v247_v10  ;;  %v252_v13 = vsel %vm250_vm13, %v238_v11, 4294967295 }
 0x1a2   :  { %v253_v15 = vsel %vm251_vm14, %v249_v12, 4294967295 }
 0x1a3   :  { %v254_v18 = vcombine.low %v252_v13, %v253_v15 }
 0x1a5   :  { %v261_v19 = vrot.slane %v254_v18, %v260_v14 }
 0x1a7   :  { %v268_v20 = vrot.slane %v261_v19, %v260_v14 }
 0x1a9   :  { %273 = vst.msk [vmem:[#allocation2] sm:$0x3] %vm271_vm15, %v268_v20 }
 0x1aa   :  { %328 = shalt.err (!%p325_p4)
}
 0x1ab   :  { %s329_s26 = scalar_lea.hbm %s406_s2, 32 }
 0x1ac   :  { %p330_p5 = scmp.ne.s32.totalorder %s406_s2, %s329_s26  ;;  %p333_p6 = scmp.lt.u32.totalorder %s329_s26, %s406_s2 }
 0x1ae   :  { %p335_p7 = pnand %p333_p6, %p330_p5 }
 0x1b0   :  { %338 = shalt.err (!%p335_p7)
}
 0x1b1   :  { %283 = dma.vmem_to_hbm [thread:$0]  %s281_s22, 32, %s406_s2, [#allocation3]  }
 0x1b2   :  { %339 = dma.done.wait [#allocation3], 32  }
 0x1b3   :  { %340 = vsyncadd [#allocation3], 4294967264 }
 0x1b4   :  { %287 = vsyncpa [#allocation3], 1 }

</bundles_post_ra>
